<compile_context>
chip_gen: v5e
topology: v5e:2x2
jax: 0.10.0
libtpu: 0.0.40
codegen_flags: <defaults>
</compile_context>

<pallas_src>
import functools

import jax
import jax.numpy as jnp
import numpy as np
from jax.experimental import pallas as pl
from jax.experimental.pallas import tpu as pltpu

LANE = 128     # lane width: pad hidden/output feature dims to a multiple of this
SUBLANE = 8    # f32 sublane granularity (kernel input/output tiles are f32)


def _round_up(x, m):
    return (x + m - 1) // m * m


def _vmem_capacity_bytes():
    """Generation-aware physical VMEM size (64 MiB fallback is v7x-safe)."""
    try:
        info = pltpu.get_tpu_info()
        for attr in ("vmem_capacity_bytes", "vmem_bytes", "vmem_size_bytes"):
            v = getattr(info, attr, None)
            if v:
                return int(v)
    except Exception:
        pass
    return 64 * 1024 * 1024


def pack_mlp_params(params, compute_dtype=jnp.bfloat16):
    """One-time weight packing (hoisted out of the per-forward path).

    * transpose nn.Linear weights (out,in) -> (in,out) so the kernel does x @ W,
    * zero-pad every *output* feature dim to a multiple of 128 (lane-dense MXU
      tiles, unmasked stores) -- zero padding is mathematically inert,
    * cast weights to bf16 once; keep biases in f32 (epilogue stays on the VPU).

    Layer-0's *input* dim is left unpadded so x can be fed straight to the
    kernel with no wrapper-side pad/cast pass.
    Returns (packed, dims) where dims are the true (unpadded) layer widths.
    """
    dims = [params[0][0].shape[1]] + [w.shape[0] for (w, _) in params]
    packed = []
    for li, (w, b) in enumerate(params):
        din = dims[li] if li == 0 else _round_up(dims[li], LANE)
        dout = _round_up(dims[li + 1], LANE)
        wt = jnp.pad(w.T.astype(compute_dtype),
                     ((0, din - w.shape[1]), (0, dout - w.shape[0])))
        bp = jnp.pad(b.astype(jnp.float32), (0, dout - b.shape[0])).reshape(1, dout)
        packed.append((wt, bp))
    return packed, dims


def fused_mlp_kernel(*refs, n_layers: int, compute_dtype):
    """Whole MLP (Linear -> ReLU -> ... -> Linear) for one batch tile.

    refs = (x_ref, w0, b0, w1, b1, ..., o_ref)
      x_ref : (TILE_B, in_dim)        f32  (cast to bf16 in-kernel)
      wi    : (in_pad_i, out_pad_i)   bf16 (pre-transposed: y = x @ W)
      bi    : (1, out_pad_i)          f32
      o_ref : (TILE_B, out_pad_last)  f32
    """
    x_ref = refs[0]
    o_ref = refs[-1]
    h = x_ref[...].astype(compute_dtype)          # in-kernel cast feeds the MXU
    for i in range(n_layers):
        w = refs[1 + 2 * i][...]
        b = refs[2 + 2 * i][...]                  # (1, out) f32 -> broadcasts
        # MXU matmul with f32 accumulation; bias-add / ReLU stay in f32 (VPU).
        y = jnp.dot(h, w, preferred_element_type=jnp.float32) + b
        if i < n_layers - 1:
            h = jnp.maximum(y, 0.0).astype(compute_dtype)
        else:
            h = y
    o_ref[...] = h.astype(o_ref.dtype)


def mlp_forward(x, packed_params, dims, *, tile_b: int = 512,
                compute_dtype=jnp.bfloat16, out_dtype=jnp.float32):
    """Fused MLP forward: Linear -> ReLU -> ... -> Linear (matches MLP.forward)."""
    batch, input_dim = x.shape
    assert input_dim == dims[0], "x feature dim must match packed params"
    n_layers = len(packed_params)
    pdims = [dims[0]] + [_round_up(d, LANE) for d in dims[1:]]
    out_pad = pdims[-1]
    out_isz = np.dtype(out_dtype).itemsize

    # ---- VMEM budget & batch-tile selection (generation-aware) -------------
    vmem_cap = _vmem_capacity_bytes()
    # Weights + biases, assume double-buffering for a conservative budget.
    wb_bytes = 2 * sum(int(w.size) * w.dtype.itemsize + int(b.size) * b.dtype.itemsize
                       for (w, b) in packed_params)
    max_pad = max(pdims)

    def tile_bytes(t):
        return (2 * t * input_dim * 4          # x tile, double-buffered, f32
                + 2 * t * out_pad * out_isz    # output tile, double-buffered
                + t * max_pad * 6)             # live bf16+f32 activation temporaries

    data_budget = int(vmem_cap * 0.6)
    # TODO(synk): if wb_bytes alone exceeds the budget (very large hidden dims,
    # mainly v7x's 64 MiB), fall back to tiling the largest layer's output dim
    # on an extra "arbitrary" grid axis instead of keeping all weights resident.

    tile = min(_round_up(tile_b, SUBLANE), _round_up(batch, SUBLANE))
    while tile > SUBLANE and wb_bytes + tile_bytes(tile) > data_budget:
        tile = max(SUBLANE, _round_up(tile // 2, SUBLANE))
    # v7x has 2 TensorCores and only the "parallel" batch axis shards across
    # them: make sure the grid has >= 2 steps whenever the batch allows it.
    if batch > SUBLANE and _round_up(batch, tile) // tile < 2:
        tile = min(tile, _round_up(pl.cdiv(batch, 2), SUBLANE))

    batch_pad = _round_up(batch, tile)
    grid = (batch_pad // tile,)
    xp = x if batch_pad == batch else jnp.pad(x, ((0, batch_pad - batch), (0, 0)))

    vmem_limit = max(32 * 1024 * 1024,
                     wb_bytes + tile_bytes(tile) + 8 * 1024 * 1024)
    vmem_limit = int(min(vmem_limit, int(vmem_cap * 0.75), 100 * 1024 * 1024))

    # ---- cost estimate from true (unpadded) dims ----------------------------
    flops = 2 * batch * sum(dims[i] * dims[i + 1] for i in range(n_layers))
    bytes_accessed = (batch * input_dim * 4
                      + sum(dims[i] * dims[i + 1] * 2 + dims[i + 1] * 4
                            for i in range(n_layers))
                      + batch * dims[-1] * out_isz)
    cost = pl.CostEstimate(flops=flops, transcendentals=0,
                           bytes_accessed=bytes_accessed)

    flat_inputs = [xp]
    for (w, b) in packed_params:
        flat_inputs += [w, b]

    kern = functools.partial(fused_mlp_kernel, n_layers=n_layers,
                             compute_dtype=compute_dtype)

    def run(single_buffer_weights):
        resident = ({"pipeline_mode": pl.Buffered(1)}   # grid-invariant blocks:
                    if single_buffer_weights else {})   # never re-fetched
        in_specs = [pl.BlockSpec((tile, input_dim), lambda i: (i, 0))]
        for li in range(n_layers):
            din, dout = pdims[li], pdims[li + 1]
            in_specs += [
                pl.BlockSpec((din, dout), lambda i: (0, 0), **resident),  # weights
                pl.BlockSpec((1, dout), lambda i: (0, 0), **resident),    # bias
            ]
        out_specs = pl.BlockSpec((tile, out_pad), lambda i: (i, 0))
        return pl.pallas_call(
            kern,
            out_shape=jax.ShapeDtypeStruct((batch_pad, out_pad), out_dtype),
            grid=grid,
            in_specs=in_specs,
            out_specs=out_specs,
            compiler_params=pltpu.CompilerParams(
                dimension_semantics=("parallel",),   # shards batch across TCs
                vmem_limit_bytes=vmem_limit),
            cost_estimate=cost,
        )(*flat_inputs)

    try:
        out = run(single_buffer_weights=True)
    except Exception:
        out = run(single_buffer_weights=False)   # fallback: default double-buffering

    return out[:batch, :dims[-1]]


def init_mlp_params(key, input_dim, hidden_dims, output_dim):
    """Deterministic parameter init matching the nn.Linear shapes in MLP.__init__."""
    dims = [input_dim] + list(hidden_dims) + [output_dim]
    params = []
    for i in range(len(dims) - 1):
        key, kw, kb = jax.random.split(key, 3)
        fan_in, fan_out = dims[i], dims[i + 1]
        bound = 1.0 / jnp.sqrt(jnp.float32(fan_in))
        w = jax.random.uniform(kw, (fan_out, fan_in), jnp.float32, -bound, bound)
        b = jax.random.uniform(kb, (fan_out,), jnp.float32, -bound, bound)
        params.append((w, b))
    return params


def mlp_reference(x, params, compute_dtype=jnp.bfloat16):
    """Pure-JAX reference mirroring the kernel's bf16-operand / f32-accum path."""
    n = len(params)
    h = x.astype(compute_dtype).astype(jnp.float32)
    for i, (w, b) in enumerate(params):
        wq = w.astype(compute_dtype).astype(jnp.float32)
        h = jnp.dot(h, wq.T, precision=jax.lax.Precision.HIGHEST) + b
        if i < n - 1:
            h = jnp.maximum(h, 0.0).astype(compute_dtype).astype(jnp.float32)
    return h


if __name__ == "__main__":
    # Small shapes consistent with MLP(input_dim, hidden_dims, output_dim)
    batch = 8
    input_dim = 16
    hidden_dims = [32, 32]
    output_dim = 8

    key = jax.random.PRNGKey(0)
    key, kx = jax.random.split(key)
    x = jax.random.normal(kx, (batch, input_dim), jnp.float32)

    params = init_mlp_params(key, input_dim, hidden_dims, output_dim)
    packed, dims = pack_mlp_params(params)     # one-time packing (hoisted)

    out = mlp_forward(x, packed, dims)
    out = jax.block_until_ready(out)

    ref = mlp_reference(x, params)
    assert out.shape == (batch, output_dim)
    assert jnp.allclose(out, ref, atol=2e-3, rtol=2e-3), "mismatch vs reference"

    print("KERNEL_OK")
</pallas_src>

<mosaic_0001>
module attributes {stable_mosaic.version = 11 : i64} {
  func.func @fused_mlp_kernel(%arg0: i32, %arg1: memref<8x16xf32, #tpu.memory_space<vmem>>, %arg2: memref<16x128xbf16, #tpu.memory_space<vmem>>, %arg3: memref<1x128xf32, #tpu.memory_space<vmem>>, %arg4: memref<128x128xbf16, #tpu.memory_space<vmem>>, %arg5: memref<1x128xf32, #tpu.memory_space<vmem>>, %arg6: memref<128x128xbf16, #tpu.memory_space<vmem>>, %arg7: memref<1x128xf32, #tpu.memory_space<vmem>>, %arg8: memref<8x128xf32, #tpu.memory_space<vmem>>) attributes {dimension_semantics = [#tpu.dimension_semantics<parallel>], iteration_bounds = array<i64: 1>, scalar_prefetch = 0 : i64, scratch_operands = 0 : i64, tpu.core_type = #tpu.core_type<tc>, window_params = [{transform_indices = @transform_0, window_bounds = array<i64: 8, 16>}, {pipeline_mode = #tpu.pipeline_mode<synchronous>, transform_indices = @transform_1, window_bounds = array<i64: 16, 128>}, {pipeline_mode = #tpu.pipeline_mode<synchronous>, transform_indices = @transform_2, window_bounds = array<i64: 1, 128>}, {pipeline_mode = #tpu.pipeline_mode<synchronous>, transform_indices = @transform_3, window_bounds = array<i64: 128, 128>}, {pipeline_mode = #tpu.pipeline_mode<synchronous>, transform_indices = @transform_4, window_bounds = array<i64: 1, 128>}, {pipeline_mode = #tpu.pipeline_mode<synchronous>, transform_indices = @transform_5, window_bounds = array<i64: 128, 128>}, {pipeline_mode = #tpu.pipeline_mode<synchronous>, transform_indices = @transform_6, window_bounds = array<i64: 1, 128>}, {transform_indices = @transform_7, window_bounds = array<i64: 8, 128>}]} {
    %c0 = arith.constant 0 : index
    %c0_0 = arith.constant 0 : index
    %0 = vector.load %arg1[%c0, %c0_0] : memref<8x16xf32, #tpu.memory_space<vmem>>, vector<8x16xf32>
    %1 = arith.truncf %0 : vector<8x16xf32> to vector<8x16xbf16>
    %c0_1 = arith.constant 0 : index
    %c0_2 = arith.constant 0 : index
    %2 = vector.load %arg2[%c0_1, %c0_2] : memref<16x128xbf16, #tpu.memory_space<vmem>>, vector<16x128xbf16>
    %c0_3 = arith.constant 0 : index
    %c0_4 = arith.constant 0 : index
    %3 = vector.load %arg3[%c0_3, %c0_4] : memref<1x128xf32, #tpu.memory_space<vmem>>, vector<1x128xf32>
    %cst = arith.constant dense<0.000000e+00> : vector<8x128xf32>
    %4 = tpu.matmul %1, %2, %cst {dimension_numbers = #tpu.dot_dimension_numbers<[1], [0], [0], [1], [0, 0, 1, 1], [], []>} : vector<8x16xbf16>, vector<16x128xbf16>, vector<8x128xf32> -> vector<8x128xf32>
    %5 = vector.broadcast %3 : vector<1x128xf32> to vector<8x128xf32>
    %6 = arith.addf %4, %5 : vector<8x128xf32>
    %cst_5 = arith.constant 0.000000e+00 : f32
    %7 = vector.broadcast %cst_5 : f32 to vector<8x128xf32>
    %8 = arith.maximumf %6, %7 : vector<8x128xf32>
    %9 = arith.truncf %8 : vector<8x128xf32> to vector<8x128xbf16>
    %c0_6 = arith.constant 0 : index
    %c0_7 = arith.constant 0 : index
    %10 = vector.load %arg4[%c0_6, %c0_7] : memref<128x128xbf16, #tpu.memory_space<vmem>>, vector<128x128xbf16>
    %c0_8 = arith.constant 0 : index
    %c0_9 = arith.constant 0 : index
    %11 = vector.load %arg5[%c0_8, %c0_9] : memref<1x128xf32, #tpu.memory_space<vmem>>, vector<1x128xf32>
    %cst_10 = arith.constant dense<0.000000e+00> : vector<8x128xf32>
    %12 = tpu.matmul %9, %10, %cst_10 {dimension_numbers = #tpu.dot_dimension_numbers<[1], [0], [0], [1], [0, 0, 1, 1], [], []>} : vector<8x128xbf16>, vector<128x128xbf16>, vector<8x128xf32> -> vector<8x128xf32>
    %13 = vector.broadcast %11 : vector<1x128xf32> to vector<8x128xf32>
    %14 = arith.addf %12, %13 : vector<8x128xf32>
    %cst_11 = arith.constant 0.000000e+00 : f32
    %15 = vector.broadcast %cst_11 : f32 to vector<8x128xf32>
    %16 = arith.maximumf %14, %15 : vector<8x128xf32>
    %17 = arith.truncf %16 : vector<8x128xf32> to vector<8x128xbf16>
    %c0_12 = arith.constant 0 : index
    %c0_13 = arith.constant 0 : index
    %18 = vector.load %arg6[%c0_12, %c0_13] : memref<128x128xbf16, #tpu.memory_space<vmem>>, vector<128x128xbf16>
    %c0_14 = arith.constant 0 : index
    %c0_15 = arith.constant 0 : index
    %19 = vector.load %arg7[%c0_14, %c0_15] : memref<1x128xf32, #tpu.memory_space<vmem>>, vector<1x128xf32>
    %cst_16 = arith.constant dense<0.000000e+00> : vector<8x128xf32>
    %20 = tpu.matmul %17, %18, %cst_16 {dimension_numbers = #tpu.dot_dimension_numbers<[1], [0], [0], [1], [0, 0, 1, 1], [], []>} : vector<8x128xbf16>, vector<128x128xbf16>, vector<8x128xf32> -> vector<8x128xf32>
    %21 = vector.broadcast %19 : vector<1x128xf32> to vector<8x128xf32>
    %22 = arith.addf %20, %21 : vector<8x128xf32>
    %c0_17 = arith.constant 0 : index
    %c0_18 = arith.constant 0 : index
    %23 = vector.load %arg8[%c0_17, %c0_18] : memref<8x128xf32, #tpu.memory_space<vmem>>, vector<8x128xf32>
    tpu.vector_store %arg8[%c0_17, %c0_18], %22 {strides = array<i32>} : memref<8x128xf32, #tpu.memory_space<vmem>>, vector<8x128xf32>,
    return
  }
  func.func @transform_0(%arg0: i32) -> (i32, i32) {
    %c0_i32 = arith.constant 0 : i32
    %c0_i32_0 = arith.constant 0 : i32
    return %arg0, %c0_i32 : i32, i32
  }
  func.func @transform_1(%arg0: i32) -> (i32, i32) {
    %c0_i32 = arith.constant 0 : i32
    %c0_i32_0 = arith.constant 0 : i32
    %c0_i32_1 = arith.constant 0 : i32
    return %c0_i32, %c0_i32_0 : i32, i32
  }
  func.func @transform_2(%arg0: i32) -> (i32, i32) {
    %c0_i32 = arith.constant 0 : i32
    %c0_i32_0 = arith.constant 0 : i32
    %c0_i32_1 = arith.constant 0 : i32
    return %c0_i32, %c0_i32_0 : i32, i32
  }
  func.func @transform_3(%arg0: i32) -> (i32, i32) {
    %c0_i32 = arith.constant 0 : i32
    %c0_i32_0 = arith.constant 0 : i32
    %c0_i32_1 = arith.constant 0 : i32
    return %c0_i32, %c0_i32_0 : i32, i32
  }
  func.func @transform_4(%arg0: i32) -> (i32, i32) {
    %c0_i32 = arith.constant 0 : i32
    %c0_i32_0 = arith.constant 0 : i32
    %c0_i32_1 = arith.constant 0 : i32
    return %c0_i32, %c0_i32_0 : i32, i32
  }
  func.func @transform_5(%arg0: i32) -> (i32, i32) {
    %c0_i32 = arith.constant 0 : i32
    %c0_i32_0 = arith.constant 0 : i32
    %c0_i32_1 = arith.constant 0 : i32
    return %c0_i32, %c0_i32_0 : i32, i32
  }
  func.func @transform_6(%arg0: i32) -> (i32, i32) {
    %c0_i32 = arith.constant 0 : i32
    %c0_i32_0 = arith.constant 0 : i32
    %c0_i32_1 = arith.constant 0 : i32
    return %c0_i32, %c0_i32_0 : i32, i32
  }
  func.func @transform_7(%arg0: i32) -> (i32, i32) {
    %c0_i32 = arith.constant 0 : i32
    %c0_i32_0 = arith.constant 0 : i32
    return %arg0, %c0_i32 : i32, i32
  }
}

module attributes {stable_mosaic.version = 11 : i64} {
  func.func @fused_mlp_kernel(%arg0: i32, %arg1: memref<8x16xf32, #tpu.memory_space<vmem>>, %arg2: memref<16x128xbf16, #tpu.memory_space<vmem>>, %arg3: memref<1x128xf32, #tpu.memory_space<vmem>>, %arg4: memref<128x128xbf16, #tpu.memory_space<vmem>>, %arg5: memref<1x128xf32, #tpu.memory_space<vmem>>, %arg6: memref<128x128xbf16, #tpu.memory_space<vmem>>, %arg7: memref<1x128xf32, #tpu.memory_space<vmem>>, %arg8: memref<8x128xf32, #tpu.memory_space<vmem>>) attributes {dimension_semantics = [#tpu.dimension_semantics<parallel>], iteration_bounds = array<i64: 1>, scalar_prefetch = 0 : i64, scratch_operands = 0 : i64, tpu.core_type = #tpu.core_type<tc>, window_params = [{transform_indices = @transform_0, window_bounds = array<i64: 8, 16>}, {pipeline_mode = #tpu.pipeline_mode<synchronous>, transform_indices = @transform_1, window_bounds = array<i64: 16, 128>}, {pipeline_mode = #tpu.pipeline_mode<synchronous>, transform_indices = @transform_2, window_bounds = array<i64: 1, 128>}, {pipeline_mode = #tpu.pipeline_mode<synchronous>, transform_indices = @transform_3, window_bounds = array<i64: 128, 128>}, {pipeline_mode = #tpu.pipeline_mode<synchronous>, transform_indices = @transform_4, window_bounds = array<i64: 1, 128>}, {pipeline_mode = #tpu.pipeline_mode<synchronous>, transform_indices = @transform_5, window_bounds = array<i64: 128, 128>}, {pipeline_mode = #tpu.pipeline_mode<synchronous>, transform_indices = @transform_6, window_bounds = array<i64: 1, 128>}, {transform_indices = @transform_7, window_bounds = array<i64: 8, 128>}]} {
    %c0 = arith.constant 0 : index
    %c0_0 = arith.constant 0 : index
    %0 = vector.load %arg1[%c0, %c0_0] : memref<8x16xf32, #tpu.memory_space<vmem>>, vector<8x16xf32>
    %1 = arith.truncf %0 : vector<8x16xf32> to vector<8x16xbf16>
    %c0_1 = arith.constant 0 : index
    %c0_2 = arith.constant 0 : index
    %2 = vector.load %arg2[%c0_1, %c0_2] : memref<16x128xbf16, #tpu.memory_space<vmem>>, vector<16x128xbf16>
    %c0_3 = arith.constant 0 : index
    %c0_4 = arith.constant 0 : index
    %3 = vector.load %arg3[%c0_3, %c0_4] : memref<1x128xf32, #tpu.memory_space<vmem>>, vector<1x128xf32>
    %cst = arith.constant dense<0.000000e+00> : vector<8x128xf32>
    %4 = tpu.matmul %1, %2, %cst {dimension_numbers = #tpu.dot_dimension_numbers<[1], [0], [0], [1], [0, 0, 1, 1], [], []>} : vector<8x16xbf16>, vector<16x128xbf16>, vector<8x128xf32> -> vector<8x128xf32>
    %5 = vector.broadcast %3 : vector<1x128xf32> to vector<8x128xf32>
    %6 = arith.addf %4, %5 : vector<8x128xf32>
    %cst_5 = arith.constant 0.000000e+00 : f32
    %7 = vector.broadcast %cst_5 : f32 to vector<8x128xf32>
    %8 = arith.maximumf %6, %7 : vector<8x128xf32>
    %9 = arith.truncf %8 : vector<8x128xf32> to vector<8x128xbf16>
    %c0_6 = arith.constant 0 : index
    %c0_7 = arith.constant 0 : index
    %10 = vector.load %arg4[%c0_6, %c0_7] : memref<128x128xbf16, #tpu.memory_space<vmem>>, vector<128x128xbf16>
    %c0_8 = arith.constant 0 : index
    %c0_9 = arith.constant 0 : index
    %11 = vector.load %arg5[%c0_8, %c0_9] : memref<1x128xf32, #tpu.memory_space<vmem>>, vector<1x128xf32>
    %cst_10 = arith.constant dense<0.000000e+00> : vector<8x128xf32>
    %12 = tpu.matmul %9, %10, %cst_10 {dimension_numbers = #tpu.dot_dimension_numbers<[1], [0], [0], [1], [0, 0, 1, 1], [], []>} : vector<8x128xbf16>, vector<128x128xbf16>, vector<8x128xf32> -> vector<8x128xf32>
    %13 = vector.broadcast %11 : vector<1x128xf32> to vector<8x128xf32>
    %14 = arith.addf %12, %13 : vector<8x128xf32>
    %cst_11 = arith.constant 0.000000e+00 : f32
    %15 = vector.broadcast %cst_11 : f32 to vector<8x128xf32>
    %16 = arith.maximumf %14, %15 : vector<8x128xf32>
    %17 = arith.truncf %16 : vector<8x128xf32> to vector<8x128xbf16>
    %c0_12 = arith.constant 0 : index
    %c0_13 = arith.constant 0 : index
    %18 = vector.load %arg6[%c0_12, %c0_13] : memref<128x128xbf16, #tpu.memory_space<vmem>>, vector<128x128xbf16>
    %c0_14 = arith.constant 0 : index
    %c0_15 = arith.constant 0 : index
    %19 = vector.load %arg7[%c0_14, %c0_15] : memref<1x128xf32, #tpu.memory_space<vmem>>, vector<1x128xf32>
    %cst_16 = arith.constant dense<0.000000e+00> : vector<8x128xf32>
    %20 = tpu.matmul %17, %18, %cst_16 {dimension_numbers = #tpu.dot_dimension_numbers<[1], [0], [0], [1], [0, 0, 1, 1], [], []>} : vector<8x128xbf16>, vector<128x128xbf16>, vector<8x128xf32> -> vector<8x128xf32>
    %21 = vector.broadcast %19 : vector<1x128xf32> to vector<8x128xf32>
    %22 = arith.addf %20, %21 : vector<8x128xf32>
    %c0_17 = arith.constant 0 : index
    %c0_18 = arith.constant 0 : index
    %23 = vector.load %arg8[%c0_17, %c0_18] : memref<8x128xf32, #tpu.memory_space<vmem>>, vector<8x128xf32>
    tpu.vector_store %arg8[%c0_17, %c0_18], %22 {strides = array<i32>} : memref<8x128xf32, #tpu.memory_space<vmem>>, vector<8x128xf32>,
    return
  }
  func.func @transform_0(%arg0: i32) -> (i32, i32) {
    %c0_i32 = arith.constant 0 : i32
    %c0_i32_0 = arith.constant 0 : i32
    return %arg0, %c0_i32 : i32, i32
  }
  func.func @transform_1(%arg0: i32) -> (i32, i32) {
    %c0_i32 = arith.constant 0 : i32
    %c0_i32_0 = arith.constant 0 : i32
    %c0_i32_1 = arith.constant 0 : i32
    return %c0_i32, %c0_i32_0 : i32, i32
  }
  func.func @transform_2(%arg0: i32) -> (i32, i32) {
    %c0_i32 = arith.constant 0 : i32
    %c0_i32_0 = arith.constant 0 : i32
    %c0_i32_1 = arith.constant 0 : i32
    return %c0_i32, %c0_i32_0 : i32, i32
  }
  func.func @transform_3(%arg0: i32) -> (i32, i32) {
    %c0_i32 = arith.constant 0 : i32
    %c0_i32_0 = arith.constant 0 : i32
    %c0_i32_1 = arith.constant 0 : i32
    return %c0_i32, %c0_i32_0 : i32, i32
  }
  func.func @transform_4(%arg0: i32) -> (i32, i32) {
    %c0_i32 = arith.constant 0 : i32
    %c0_i32_0 = arith.constant 0 : i32
    %c0_i32_1 = arith.constant 0 : i32
    return %c0_i32, %c0_i32_0 : i32, i32
  }
  func.func @transform_5(%arg0: i32) -> (i32, i32) {
    %c0_i32 = arith.constant 0 : i32
    %c0_i32_0 = arith.constant 0 : i32
    %c0_i32_1 = arith.constant 0 : i32
    return %c0_i32, %c0_i32_0 : i32, i32
  }
  func.func @transform_6(%arg0: i32) -> (i32, i32) {
    %c0_i32 = arith.constant 0 : i32
    %c0_i32_0 = arith.constant 0 : i32
    %c0_i32_1 = arith.constant 0 : i32
    return %c0_i32, %c0_i32_0 : i32, i32
  }
  func.func @transform_7(%arg0: i32) -> (i32, i32) {
    %c0_i32 = arith.constant 0 : i32
    %c0_i32_0 = arith.constant 0 : i32
    return %arg0, %c0_i32 : i32, i32
  }
}

</mosaic_0001>

<bundles_post_ra>
// kernel: tpu_custom_call.1
= control target key start
LH: loop header
LB: loop body
LE: loop exit
PB: predicated region body
PF: predicated region fallthrough
CT: control target
= control target key end

     0   :  { %12 = vsyncpa [#allocation3], 0  ;;  %s601_s0 = inlined_call_operand.hbm [shape: f32[8,16], index: 0, kind: input, shape index: {}]   ;;  %s602_s1 = inlined_call_operand.hbm [shape: bf16[16,128], index: 1, kind: input, shape index: {}]   ;;  %s603_s2 = inlined_call_operand.vmem [shape: f32[1,128], index: 2, kind: input, shape index: {}]   ;;  %s604_s3 = inlined_call_operand.hbm [shape: bf16[128,128], index: 3, kind: input, shape index: {}]   ;;  %s605_s4 = inlined_call_operand.vmem [shape: f32[1,128], index: 4, kind: input, shape index: {}]   ;;  %s606_s5 = inlined_call_operand.hbm [shape: bf16[128,128], index: 5, kind: input, shape index: {}]   ;;  %s607_s6 = inlined_call_operand.vmem [shape: f32[1,128], index: 6, kind: input, shape index: {}]   ;;  %s608_s7 = inlined_call_operand.hbm [shape: f32[8,128], index: 7, kind: output, shape index: {}]  }
   0x1   :  { %13 = vsyncpa [#allocation6], 0 }
   0x2   :  { %14 = vsyncpa [#allocation9], 0  ;;  %s31_s26 = sshll.u32 %s602_s1, 4  ;;  %s32_s26 = int_to_ptr.hbm [resolvable:$true] %s31_s26 }
   0x3   :  { %15 = vsyncpa [#allocation4], 0  ;;  %s530_s27 = smov [#allocation5]   ;;  %s21_s8 = sshll.u32 %s601_s0, 4  ;;  %s22_s8 = int_to_ptr.hbm [resolvable:$true] %s21_s8 }
   0x4   :  { %s33_s28 = sshll.u32 %s530_s27, 4  ;;  %s531_s9 = smov 64   ;;  %s34_s28 = int_to_ptr.vmem [resolvable:$true] %s33_s28 }
   0x5   :  { %s532_s10 = smov 4   ;;  %s533_s11 = smov [#allocation2]  }
   0x6   :  { %39 = dma.hbm_to_vmem [thread:$0]  %s32_s26, 128, %s34_s28, [#allocation6], %s531_s9, %s531_s9, %s532_s10  }
   0x7   :  { %s23_s12 = sshll.u32 %s533_s11, 4  ;;  %s46_s15 = sshll.u32 %s604_s3, 4  ;;  %s24_s12 = int_to_ptr.vmem [resolvable:$true] %s23_s12  ;;  %s47_s15 = int_to_ptr.hbm [resolvable:$true] %s46_s15 }
   0x8   :  { %26 = dma.hbm_to_vmem [thread:$0]  %s22_s8, 128, %s24_s12, [#allocation3]  }
   0x9   :  { %s61_s17 = sshll.u32 %s606_s5, 4  ;;  %s534_s18 = smov [#allocation7]   ;;  %s62_s17 = int_to_ptr.hbm [resolvable:$true] %s61_s17 }
   0xa   :  { %s48_s19 = sshll.u32 %s534_s18, 4  ;;  %s535_s0 = smov [#allocation8]   ;;  %s49_s19 = int_to_ptr.vmem [resolvable:$true] %s48_s19 }
   0xb   :  { %54 = dma.hbm_to_vmem [thread:$0]  %s47_s15, 1024, %s49_s19, [#allocation6], %s531_s9, %s531_s9, %s532_s10  }
   0xc   :  { %s63_s20 = sshll.u32 %s535_s0, 4  ;;  %s64_s20 = int_to_ptr.vmem [resolvable:$true] %s63_s20 }
   0xd   :  { %69 = dma.hbm_to_vmem [thread:$0]  %s62_s17, 1024, %s64_s20, [#allocation9], %s531_s9, %s531_s9, %s532_s10  }
   0xe   :  { %522 = dma.done.wait [#allocation3], 128  }
   0xf   :  { %523 = vsyncadd [#allocation3], 4294967168 }
  0x10   :  { %524 = dma.done.wait [#allocation6], 1152  }
  0x11   :  { %525 = vsyncadd [#allocation6], 4294966144 }
  0x12   :  { %526 = dma.done.wait [#allocation9], 1024  }
  0x13   :  { %527 = vsyncadd [#allocation9], 4294966272  ;;  %v375_v0 = vld [vmem:[#allocation5] sm:$0xff]  ;;  %v89_v1 = vld [vmem:[#allocation2] sm:$0xff]  ;;  %vm103_vm0 = vcmask 130048   ;;  %s536_s24 = smov [#allocation10]  }
  0x14   :  { %v383_v2 = vld [vmem:[#allocation7 + $0x38] sm:$0xff]  ;;  %v90_v3 = vpack.c.bf16 %v89_v1, %v89_v1  ;;  %114 = vmatpush.bf16.msra.mxu0 %v375_v0  ;;  %v382_v4 = vld [vmem:[#allocation7 + $0x30] sm:$0xff]  ;;  %v381_v5 = vld [vmem:[#allocation7 + $0x28] sm:$0xff]  ;;  %s292_s25 = sshll.u32 %s536_s24, 4  ;;  %s294_s28 = sshll.u32 %s608_s7, 4  ;;  %s293_s25 = int_to_ptr.vmem [resolvable:$true] %s292_s25  ;;  %s295_s28 = int_to_ptr.hbm [resolvable:$true] %s294_s28 }
  0x15   :  { %190 = vmatpush.bf16.msra.mxu1 %v383_v2  ;;  %v380_v6 = vld [vmem:[#allocation7 + $0x20] sm:$0xff]  ;;  %v379_v7 = vld [vmem:[#allocation7 + $0x18] sm:$0xff]  ;;  %v378_v8 = vld [vmem:[#allocation7 + $0x10] sm:$0xff] }
  0x16   :  { %v377_v9 = vld [vmem:[#allocation7 + $0x8] sm:$0xff]  ;;  %v376_v10 = vld [vmem:[#allocation7] sm:$0xff]  ;;  %v391_v11 = vld [vmem:[#allocation8 + $0x38] sm:$0xff] }
  0x17   :  { %310 = vmatmul.msk.bf16.vlgmr.msra.gmra.mxu0 %vm103_vm0, %v90_v3  ;;  %273 = vmatpush.bf16.msra.mxu2 %v391_v11  ;;  %v390_v12 = vld [vmem:[#allocation8 + $0x30] sm:$0xff]  ;;  %v389_v13 = vld [vmem:[#allocation8 + $0x28] sm:$0xff]  ;;  %v388_v14 = vld [vmem:[#allocation8 + $0x20] sm:$0xff] }
  0x18   :  { %v387_v15 = vld [vmem:[#allocation8 + $0x18] sm:$0xff]  ;;  %v386_v16 = vld [vmem:[#allocation8 + $0x10] sm:$0xff]  ;;  %v385_v23 = vld [vmem:[#allocation8 + $0x8] sm:$0xff] }
  0x19   :  { %191 = vmatpush.bf16.msra.mxu1 %v382_v4  ;;  %v399_v17 = vld [vmem:[%s603_s2] ss:$0 sm:$0xff]  ;;  %v384_v24 = vld [vmem:[#allocation8] sm:$0xff] }
  0x1a   :  { %v400_v25 = vld [vmem:[%s605_s4] ss:$0 sm:$0xff] }
  0x1b   :  { %274 = vmatpush.bf16.msra.mxu2 %v390_v12  ;;  %v401_v31 = vld [vmem:[%s607_s6] ss:$0 sm:$0xff] }
  0x1d   :  { %192 = vmatpush.bf16.msra.mxu1 %v381_v5 }
  0x1f   :  { %275 = vmatpush.bf16.msra.mxu2 %v389_v13 }
  0x21   :  { %193 = vmatpush.bf16.msra.mxu1 %v380_v6 }
  0x23   :  { %276 = vmatpush.bf16.msra.mxu2 %v388_v14 }
  0x25   :  { %194 = vmatpush.bf16.msra.mxu1 %v379_v7 }
  0x27   :  { %277 = vmatpush.bf16.msra.mxu2 %v387_v15 }
  0x29   :  { %195 = vmatpush.bf16.msra.mxu1 %v378_v8 }
  0x2b   :  { %278 = vmatpush.bf16.msra.mxu2 %v386_v16 }
  0x2d   :  { %196 = vmatpush.bf16.msra.mxu1 %v377_v9 }
  0x2f   :  { %279 = vmatpush.bf16.msra.mxu2 %v385_v23 }
  0x31   :  { %197 = vmatpush.bf16.msra.mxu1 %v376_v10 }
  0x33   :  { %280 = vmatpush.bf16.msra.mxu2 %v384_v24 }
  0x94   :  { %v116_v18 = vpop.f32.mrf.mxu0 }
  0x95   :  { %v117_v19 = vadd.f32 %v399_v17, %v116_v18 }
  0x97   :  { %v120_v20 = vmax.f32 %v117_v19, 0.0 }
  0x99   :  { %v121_v21 = vpack.c.bf16 %v120_v20, %v120_v20 }
  0x9b   :  { %198 = vmatmul.bf16.vlgmr.msra.gmra.mxu1 %v121_v21 }
  0x9c   :  { %v118_v22 = vpop.f32.mrf.mxu0 }
 0x118   :  { %v199_v26 = vpop.f32.mrf.mxu1 }
 0x119   :  { %v200_v27 = vadd.f32 %v400_v25, %v199_v26 }
 0x11b   :  { %v203_v28 = vmax.f32 %v200_v27, 0.0 }
 0x11d   :  { %v204_v29 = vpack.c.bf16 %v203_v28, %v203_v28 }
 0x11f   :  { %281 = vmatmul.bf16.vlgmr.msra.gmra.mxu2 %v204_v29 }
 0x120   :  { %v201_v30 = vpop.f32.mrf.mxu1 }
 0x1a2   :  { %v282_v32 = vpop.f32.mrf.mxu2 }
 0x1a3   :  { %v283_v33 = vadd.f32 %v401_v31, %v282_v32 }
 0x1a5   :  { %286 = vst [vmem:[#allocation10] sm:$0xff] %v283_v33 }
 0x1a6   :  { %297 = dma.vmem_to_hbm [thread:$0]  %s293_s25, 128, %s295_s28, [#allocation4]  }
 0x1aa   :  { %v284_v34 = vpop.f32.mrf.mxu2 }
 0x1ab   :  { %528 = dma.done.wait [#allocation4], 128  }
 0x1ac   :  { %529 = vsyncadd [#allocation4], 4294967168 }
 0x1ad   :  { %302 = vsyncpa [#allocation3], 1 }
 0x1ae   :  { %303 = vsyncpa [#allocation6], 1 }
 0x1af   :  { %304 = vsyncpa [#allocation9], 1 }
 0x1b0   :  { %305 = vsyncpa [#allocation4], 1 }

// kernel: tpu_custom_call.1
= control target key start
LH: loop header
LB: loop body
LE: loop exit
PB: predicated region body
PF: predicated region fallthrough
CT: control target
= control target key end

     0   :  { %12 = vsyncpa [#allocation3], 0  ;;  %s601_s0 = inlined_call_operand.hbm [shape: f32[8,16], index: 0, kind: input, shape index: {}]   ;;  %s602_s1 = inlined_call_operand.hbm [shape: bf16[16,128], index: 1, kind: input, shape index: {}]   ;;  %s603_s2 = inlined_call_operand.vmem [shape: f32[1,128], index: 2, kind: input, shape index: {}]   ;;  %s604_s3 = inlined_call_operand.hbm [shape: bf16[128,128], index: 3, kind: input, shape index: {}]   ;;  %s605_s4 = inlined_call_operand.vmem [shape: f32[1,128], index: 4, kind: input, shape index: {}]   ;;  %s606_s5 = inlined_call_operand.hbm [shape: bf16[128,128], index: 5, kind: input, shape index: {}]   ;;  %s607_s6 = inlined_call_operand.vmem [shape: f32[1,128], index: 6, kind: input, shape index: {}]   ;;  %s608_s7 = inlined_call_operand.hbm [shape: f32[8,128], index: 7, kind: output, shape index: {}]  }
   0x1   :  { %13 = vsyncpa [#allocation6], 0 }
   0x2   :  { %14 = vsyncpa [#allocation9], 0  ;;  %s31_s26 = sshll.u32 %s602_s1, 4  ;;  %s32_s26 = int_to_ptr.hbm [resolvable:$true] %s31_s26 }
   0x3   :  { %15 = vsyncpa [#allocation4], 0  ;;  %s530_s27 = smov [#allocation5]   ;;  %s21_s8 = sshll.u32 %s601_s0, 4  ;;  %s22_s8 = int_to_ptr.hbm [resolvable:$true] %s21_s8 }
   0x4   :  { %s33_s28 = sshll.u32 %s530_s27, 4  ;;  %s531_s9 = smov 64   ;;  %s34_s28 = int_to_ptr.vmem [resolvable:$true] %s33_s28 }
   0x5   :  { %s532_s10 = smov 4   ;;  %s533_s11 = smov [#allocation2]  }
   0x6   :  { %39 = dma.hbm_to_vmem [thread:$0]  %s32_s26, 128, %s34_s28, [#allocation6], %s531_s9, %s531_s9, %s532_s10  }
   0x7   :  { %s23_s12 = sshll.u32 %s533_s11, 4  ;;  %s46_s15 = sshll.u32 %s604_s3, 4  ;;  %s24_s12 = int_to_ptr.vmem [resolvable:$true] %s23_s12  ;;  %s47_s15 = int_to_ptr.hbm [resolvable:$true] %s46_s15 }
   0x8   :  { %26 = dma.hbm_to_vmem [thread:$0]  %s22_s8, 128, %s24_s12, [#allocation3]  }
   0x9   :  { %s61_s17 = sshll.u32 %s606_s5, 4  ;;  %s534_s18 = smov [#allocation7]   ;;  %s62_s17 = int_to_ptr.hbm [resolvable:$true] %s61_s17 }
   0xa   :  { %s48_s19 = sshll.u32 %s534_s18, 4  ;;  %s535_s0 = smov [#allocation8]   ;;  %s49_s19 = int_to_ptr.vmem [resolvable:$true] %s48_s19 }
   0xb   :  { %54 = dma.hbm_to_vmem [thread:$0]  %s47_s15, 1024, %s49_s19, [#allocation6], %s531_s9, %s531_s9, %s532_s10  }
   0xc   :  { %s63_s20 = sshll.u32 %s535_s0, 4  ;;  %s64_s20 = int_to_ptr.vmem [resolvable:$true] %s63_s20 }
   0xd   :  { %69 = dma.hbm_to_vmem [thread:$0]  %s62_s17, 1024, %s64_s20, [#allocation9], %s531_s9, %s531_s9, %s532_s10  }
   0xe   :  { %522 = dma.done.wait [#allocation3], 128  }
   0xf   :  { %523 = vsyncadd [#allocation3], 4294967168 }
  0x10   :  { %524 = dma.done.wait [#allocation6], 1152  }
  0x11   :  { %525 = vsyncadd [#allocation6], 4294966144 }
  0x12   :  { %526 = dma.done.wait [#allocation9], 1024  }
  0x13   :  { %527 = vsyncadd [#allocation9], 4294966272  ;;  %v375_v0 = vld [vmem:[#allocation5] sm:$0xff]  ;;  %v89_v1 = vld [vmem:[#allocation2] sm:$0xff]  ;;  %vm103_vm0 = vcmask 130048   ;;  %s536_s24 = smov [#allocation10]  }
  0x14   :  { %v383_v2 = vld [vmem:[#allocation7 + $0x38] sm:$0xff]  ;;  %v90_v3 = vpack.c.bf16 %v89_v1, %v89_v1  ;;  %114 = vmatpush.bf16.msra.mxu0 %v375_v0  ;;  %v382_v4 = vld [vmem:[#allocation7 + $0x30] sm:$0xff]  ;;  %v381_v5 = vld [vmem:[#allocation7 + $0x28] sm:$0xff]  ;;  %s292_s25 = sshll.u32 %s536_s24, 4  ;;  %s294_s28 = sshll.u32 %s608_s7, 4  ;;  %s293_s25 = int_to_ptr.vmem [resolvable:$true] %s292_s25  ;;  %s295_s28 = int_to_ptr.hbm [resolvable:$true] %s294_s28 }
  0x15   :  { %190 = vmatpush.bf16.msra.mxu1 %v383_v2  ;;  %v380_v6 = vld [vmem:[#allocation7 + $0x20] sm:$0xff]  ;;  %v379_v7 = vld [vmem:[#allocation7 + $0x18] sm:$0xff]  ;;  %v378_v8 = vld [vmem:[#allocation7 + $0x10] sm:$0xff] }
  0x16   :  { %v377_v9 = vld [vmem:[#allocation7 + $0x8] sm:$0xff]  ;;  %v376_v10 = vld [vmem:[#allocation7] sm:$0xff]  ;;  %v391_v11 = vld [vmem:[#allocation8 + $0x38] sm:$0xff] }
  0x17   :  { %310 = vmatmul.msk.bf16.vlgmr.msra.gmra.mxu0 %vm103_vm0, %v90_v3  ;;  %273 = vmatpush.bf16.msra.mxu2 %v391_v11  ;;  %v390_v12 = vld [vmem:[#allocation8 + $0x30] sm:$0xff]  ;;  %v389_v13 = vld [vmem:[#allocation8 + $0x28] sm:$0xff]  ;;  %v388_v14 = vld [vmem:[#allocation8 + $0x20] sm:$0xff] }
  0x18   :  { %v387_v15 = vld [vmem:[#allocation8 + $0x18] sm:$0xff]  ;;  %v386_v16 = vld [vmem:[#allocation8 + $0x10] sm:$0xff]  ;;  %v385_v23 = vld [vmem:[#allocation8 + $0x8] sm:$0xff] }
  0x19   :  { %191 = vmatpush.bf16.msra.mxu1 %v382_v4  ;;  %v399_v17 = vld [vmem:[%s603_s2] ss:$0 sm:$0xff]  ;;  %v384_v24 = vld [vmem:[#allocation8] sm:$0xff] }
  0x1a   :  { %v400_v25 = vld [vmem:[%s605_s4] ss:$0 sm:$0xff] }
  0x1b   :  { %274 = vmatpush.bf16.msra.mxu2 %v390_v12  ;;  %v401_v31 = vld [vmem:[%s607_s6] ss:$0 sm:$0xff] }
  0x1d   :  { %192 = vmatpush.bf16.msra.mxu1 %v381_v5 }
  0x1f   :  { %275 = vmatpush.bf16.msra.mxu2 %v389_v13 }
  0x21   :  { %193 = vmatpush.bf16.msra.mxu1 %v380_v6 }
  0x23   :  { %276 = vmatpush.bf16.msra.mxu2 %v388_v14 }
  0x25   :  { %194 = vmatpush.bf16.msra.mxu1 %v379_v7 }
  0x27   :  { %277 = vmatpush.bf16.msra.mxu2 %v387_v15 }
  0x29   :  { %195 = vmatpush.bf16.msra.mxu1 %v378_v8 }
  0x2b   :  { %278 = vmatpush.bf16.msra.mxu2 %v386_v16 }
  0x2d   :  { %196 = vmatpush.bf16.msra.mxu1 %v377_v9 }
  0x2f   :  { %279 = vmatpush.bf16.msra.mxu2 %v385_v23 }
  0x31   :  { %197 = vmatpush.bf16.msra.mxu1 %v376_v10 }
  0x33   :  { %280 = vmatpush.bf16.msra.mxu2 %v384_v24 }
  0x94   :  { %v116_v18 = vpop.f32.mrf.mxu0 }
  0x95   :  { %v117_v19 = vadd.f32 %v399_v17, %v116_v18 }
  0x97   :  { %v120_v20 = vmax.f32 %v117_v19, 0.0 }
  0x99   :  { %v121_v21 = vpack.c.bf16 %v120_v20, %v120_v20 }
  0x9b   :  { %198 = vmatmul.bf16.vlgmr.msra.gmra.mxu1 %v121_v21 }
  0x9c   :  { %v118_v22 = vpop.f32.mrf.mxu0 }
 0x118   :  { %v199_v26 = vpop.f32.mrf.mxu1 }
 0x119   :  { %v200_v27 = vadd.f32 %v400_v25, %v199_v26 }
 0x11b   :  { %v203_v28 = vmax.f32 %v200_v27, 0.0 }
 0x11d   :  { %v204_v29 = vpack.c.bf16 %v203_v28, %v203_v28 }
 0x11f   :  { %281 = vmatmul.bf16.vlgmr.msra.gmra.mxu2 %v204_v29 }
 0x120   :  { %v201_v30 = vpop.f32.mrf.mxu1 }
 0x1a2   :  { %v282_v32 = vpop.f32.mrf.mxu2 }
 0x1a3   :  { %v283_v33 = vadd.f32 %v401_v31, %v282_v32 }
 0x1a5   :  { %286 = vst [vmem:[#allocation10] sm:$0xff] %v283_v33 }
 0x1a6   :  { %297 = dma.vmem_to_hbm [thread:$0]  %s293_s25, 128, %s295_s28, [#allocation4]  }
 0x1aa   :  { %v284_v34 = vpop.f32.mrf.mxu2 }
 0x1ab   :  { %528 = dma.done.wait [#allocation4], 128  }
 0x1ac   :  { %529 = vsyncadd [#allocation4], 4294967168 }
 0x1ad   :  { %302 = vsyncpa [#allocation3], 1 }
 0x1ae   :  { %303 = vsyncpa [#allocation6], 1 }
 0x1af   :  { %304 = vsyncpa [#allocation9], 1 }
 0x1b0   :  { %305 = vsyncpa [#allocation4], 1 }

</bundles_post_ra>
